<compile_context>
chip_gen: v7x
topology: tpu7x:2x2x1
jax: 0.10.0
libtpu: 0.0.40
codegen_flags: <defaults>
</compile_context>

<pallas_src>
import functools

import jax
import jax.numpy as jnp
from jax.experimental import pallas as pl
from jax.experimental.pallas import tpu as pltpu


# ----------------------------- configuration --------------------------------
B = 4            # batch            (folded into lanes -> B*H = 128 lanes)
S = 8            # input_size       (max sequence length == Conv1d channels)
H = 32           # hidden_dim       (Conv1d "length" axis, LayerNorm axis)
N_LAYERS = 2     # n_layers
NUM_LABELS = 2   # num_labels
LN_EPS = 1e-5    # PyTorch nn.LayerNorm default


# ------------------------------- the kernel ---------------------------------
def qa_conv_sds_head_kernel(
    x_ref,      # (S, B*H)         activations, batch folded into lanes
    w1_ref,     # (L, 2S, S)       conv1 weight (kernel_size=1 squeezed)
    w2s_ref,    # (L, 3S, 2S)      conv2 weight, taps stacked along output rows
    b12_ref,    # (L, 3S, 1)       [conv1 bias (2S) ; conv2 bias (S)]
    gb_ref,     # (L, 2, B*H)      [gamma ; beta], tiled across batch segments
    bd_ref,     # (B*H, B*H)       block-diag ones / H  (segmented mean matmul)
    wqp_ref,    # (B*H+1, B*NL)    block-diag qa weight with bias row appended
    o_ref,      # (S, B*NL)
    *,
    n_layers: int,
    hdim: int,
):
    f32 = jnp.float32
    s, bh = x_ref.shape
    two_s = w1_ref.shape[1]

    x = x_ref[...].astype(f32)                              # (S, BH)

    # Per-H-segment boundary masks (conv2 padding must not leak across the
    # folded batch segments).
    lane_in_seg = jax.lax.broadcasted_iota(jnp.int32, (s, bh), 1) % hdim
    seg_first = lane_in_seg == 0
    seg_last = lane_in_seg == hdim - 1
    zero_col = jnp.zeros((s, 1), f32)

    bd = bd_ref[...]                                        # (BH, BH), /H folded in

    for l in range(n_layers):                               # static unroll
        w1 = w1_ref[l]                                      # (2S, S)
        w2s = w2s_ref[l]                                    # (3S, 2S)
        b12 = b12_ref[l]                                    # (3S, 1)
        gb = gb_ref[l]                                      # (2, BH)

        # ---- conv1: 1x1 conv over the sequence axis == one (2S,S)@(S,BH) ----
        h1 = jnp.dot(w1, x, preferred_element_type=f32) + b12[0:two_s]

        # ---- conv2: kernel_size=3, padding=1 along H, all taps in ONE dot ----
        cc = jnp.dot(w2s, h1, preferred_element_type=f32)   # (3S, BH)
        c0 = cc[0:s]                                        # tap at offset -1
        c1 = cc[s:2 * s]                                    # tap at offset  0
        c2 = cc[2 * s:3 * s]                                # tap at offset +1
        c0 = jnp.where(seg_first, 0.0,
                       jnp.concatenate([zero_col, c0[:, :-1]], axis=1))
        c2 = jnp.where(seg_last, 0.0,
                       jnp.concatenate([c2[:, 1:], zero_col], axis=1))
        c = c0 + c1 + c2 + b12[two_s:]                      # (S, BH) + (S, 1)

        # ---- residual + relu ----
        y = x + jnp.maximum(c, 0.0)

        # ---- LayerNorm over each H segment (one-pass stats on the MXU) ----
        mean = jnp.dot(y, bd, preferred_element_type=f32)       # E[y]  per seg
        ex2 = jnp.dot(y * y, bd, preferred_element_type=f32)    # E[y^2] per seg
        var = ex2 - mean * mean
        x = (y - mean) * jax.lax.rsqrt(var + LN_EPS)
        x = x * gb[0:1] + gb[1:2]                           # (S,BH)*(1,BH)+(1,BH)

    # ---- qa_output: Linear(hidden_dim, num_labels), block-diag per batch ----
    wqp = wqp_ref[...]                                      # (BH+1, B*NL)
    out = jnp.dot(x, wqp[0:bh], preferred_element_type=f32) + wqp[bh:bh + 1]
    o_ref[...] = out.astype(o_ref.dtype)


# ------------------------------- the wrapper ---------------------------------
def qa_conv_sds_head(x, pk):
    """x: (B, S, H) float32; pk: packed params.  Returns (B, S, NUM_LABELS)."""
    b, s, h = x.shape
    L, two_s, _ = pk["w1"].shape
    bh = b * h
    bnl = pk["wqp"].shape[1]
    nl = bnl // b

    # Layout plumbing: fold batch into the lane axis -> (S, B*H).
    x2 = x.transpose(1, 0, 2).reshape(s, bh)

    full = lambda shape: pl.BlockSpec(shape, lambda i: (0,) * len(shape))
    kernel = functools.partial(qa_conv_sds_head_kernel, n_layers=L, hdim=h)

    out2 = pl.pallas_call(
        kernel,
        out_shape=jax.ShapeDtypeStruct((s, bnl), jnp.float32),
        grid_spec=pltpu.PrefetchScalarGridSpec(
            num_scalar_prefetch=0,
            grid=(1,),                       # single step: whole batch at once
            in_specs=[
                full((s, bh)),               # x (batch-folded)
                full(pk["w1"].shape),
                full(pk["w2s"].shape),
                full(pk["b12"].shape),
                full(pk["gb"].shape),
                full(pk["bd"].shape),
                full(pk["wqp"].shape),
            ],
            out_specs=pl.BlockSpec((s, bnl), lambda i: (0, 0)),
        ),
        compiler_params=pltpu.CompilerParams(
            dimension_semantics=("arbitrary",),
        ),
    )(x2, pk["w1"], pk["w2s"], pk["b12"], pk["gb"], pk["bd"], pk["wqp"])

    return out2.reshape(s, b, nl).transpose(1, 0, 2)        # (B, S, NL)


# --------------------------- deterministic params ----------------------------
def make_params(key):
    """Raw (PyTorch-layout-equivalent) parameters."""
    ks = jax.random.split(key, 8)
    scale = 0.1
    # conv1: PyTorch weight (2S, S, 1) -> kernel dim squeezed -> (L, 2S, S)
    w1 = scale * jax.random.normal(ks[0], (N_LAYERS, 2 * S, S), jnp.float32)
    b1 = scale * jax.random.normal(ks[1], (N_LAYERS, 2 * S), jnp.float32)
    # conv2: PyTorch weight (S, 2S, 3) -> stored tap-major as (L, 3, S, 2S)
    w2 = scale * jax.random.normal(ks[2], (N_LAYERS, 3, S, 2 * S), jnp.float32)
    b2 = scale * jax.random.normal(ks[3], (N_LAYERS, S), jnp.float32)
    gamma = 1.0 + 0.1 * jax.random.normal(ks[4], (N_LAYERS, H), jnp.float32)
    beta = 0.1 * jax.random.normal(ks[5], (N_LAYERS, H), jnp.float32)
    # qa_output: PyTorch Linear weight (NL, H) -> stored transposed (H, NL)
    wq = scale * jax.random.normal(ks[6], (H, NUM_LABELS), jnp.float32)
    bq = scale * jax.random.normal(ks[7], (NUM_LABELS,), jnp.float32)
    return dict(w1=w1, b1=b1, w2=w2, b2=b2, gamma=gamma, beta=beta, wq=wq, bq=bq)


def pack_params(p, batch=B):
    """Host-side, one-time packing into the kernel's operand layout."""
    L, _, s = p["w1"].shape
    h = p["gamma"].shape[1]
    # conv2 taps stacked along the output-row axis: (L, 3S, 2S)
    w2s = p["w2"].reshape(L, 3 * s, 2 * s)
    # biases packed: [b1 (2S) ; b2 (S)] -> (L, 3S, 1)
    b12 = jnp.concatenate([p["b1"], p["b2"]], axis=1)[..., None]
    # gamma/beta tiled across the folded batch segments and packed: (L, 2, B*H)
    gb = jnp.stack([jnp.tile(p["gamma"], (1, batch)),
                    jnp.tile(p["beta"], (1, batch))], axis=1)
    # block-diagonal ones (scaled by 1/H) -> segmented mean via one matmul
    bd = jnp.kron(jnp.eye(batch, dtype=jnp.float32),
                  jnp.full((h, h), 1.0 / h, jnp.float32))
    # qa weight as block-diag (per batch segment) with the bias row appended
    wq_big = jnp.kron(jnp.eye(batch, dtype=jnp.float32), p["wq"])
    wqp = jnp.concatenate([wq_big, jnp.tile(p["bq"], batch)[None, :]], axis=0)
    return dict(w1=p["w1"], w2s=w2s, b12=b12, gb=gb, bd=bd, wqp=wqp)


# ----------------------------- plain-JAX reference ---------------------------
def ref_forward(x, p):
    for l in range(N_LAYERS):
        h = jnp.einsum("os,bsh->boh", p["w1"][l], x) + p["b1"][l][None, :, None]
        hp = jnp.pad(h, ((0, 0), (0, 0), (1, 1)))
        c = sum(
            jnp.einsum("os,bsh->boh", p["w2"][l, k], hp[:, :, k:k + H])
            for k in range(3)
        ) + p["b2"][l][None, :, None]
        y = x + jnp.maximum(c, 0.0)
        mean = y.mean(-1, keepdims=True)
        var = ((y - mean) ** 2).mean(-1, keepdims=True)
        x = (y - mean) * jax.lax.rsqrt(var + LN_EPS) * p["gamma"][l][None, None, :] \
            + p["beta"][l][None, None, :]
    return x @ p["wq"] + p["bq"]


# ----------------------------------- main ------------------------------------
if __name__ == "__main__":
    key = jax.random.PRNGKey(0)
    k_x, k_p = jax.random.split(key)
    x = jax.random.normal(k_x, (B, S, H), jnp.float32)
    raw = make_params(k_p)
    packed = pack_params(raw)

    out = qa_conv_sds_head(x, packed)
    out = jax.block_until_ready(out)

    ref = ref_forward(x, raw)
    assert out.shape == (B, S, NUM_LABELS), out.shape
    max_err = float(jnp.max(jnp.abs(out - ref)))
    assert jnp.allclose(out, ref, atol=1e-4, rtol=1e-4), max_err

    print("KERNEL_OK")
</pallas_src>

<mosaic_0001>
module attributes {stable_mosaic.version = 11 : i64} {
  func.func @qa_conv_sds_head_kernel(%arg0: i32, %arg1: memref<8x128xf32, #tpu.memory_space<vmem>>, %arg2: memref<2x16x8xf32, #tpu.memory_space<vmem>>, %arg3: memref<2x24x16xf32, #tpu.memory_space<vmem>>, %arg4: memref<2x24x1xf32, #tpu.memory_space<vmem>>, %arg5: memref<2x2x128xf32, #tpu.memory_space<vmem>>, %arg6: memref<128x128xf32, #tpu.memory_space<vmem>>, %arg7: memref<129x8xf32, #tpu.memory_space<vmem>>, %arg8: memref<8x8xf32, #tpu.memory_space<vmem>>) attributes {dimension_semantics = [#tpu.dimension_semantics<arbitrary>], iteration_bounds = array<i64: 1>, scalar_prefetch = 0 : i64, scratch_operands = 0 : i64, tpu.core_type = #tpu.core_type<tc>, window_params = [{pipeline_mode = #tpu.pipeline_mode<synchronous>, transform_indices = @transform_0, window_bounds = array<i64: 8, 128>}, {pipeline_mode = #tpu.pipeline_mode<synchronous>, transform_indices = @transform_1, window_bounds = array<i64: 2, 16, 8>}, {pipeline_mode = #tpu.pipeline_mode<synchronous>, transform_indices = @transform_2, window_bounds = array<i64: 2, 24, 16>}, {pipeline_mode = #tpu.pipeline_mode<synchronous>, transform_indices = @transform_3, window_bounds = array<i64: 2, 24, 1>}, {pipeline_mode = #tpu.pipeline_mode<synchronous>, transform_indices = @transform_4, window_bounds = array<i64: 2, 2, 128>}, {pipeline_mode = #tpu.pipeline_mode<synchronous>, transform_indices = @transform_5, window_bounds = array<i64: 128, 128>}, {pipeline_mode = #tpu.pipeline_mode<synchronous>, transform_indices = @transform_6, window_bounds = array<i64: 129, 8>}, {pipeline_mode = #tpu.pipeline_mode<synchronous>, transform_indices = @transform_7, window_bounds = array<i64: 8, 8>}]} {
    %c0 = arith.constant 0 : index
    %c0_0 = arith.constant 0 : index
    %0 = vector.load %arg1[%c0, %c0_0] : memref<8x128xf32, #tpu.memory_space<vmem>>, vector<8x128xf32>
    %1 = tpu.iota {dimensions = array<i32: 1>} : vector<8x128xi32>
    %c32_i32 = arith.constant 32 : i32
    %c0_i32 = arith.constant 0 : i32
    %2 = arith.cmpi eq, %c32_i32, %c0_i32 : i32
    %c1_i32 = arith.constant 1 : i32
    %3 = arith.select %2, %c1_i32, %c32_i32 : i32
    %4 = vector.broadcast %3 : i32 to vector<8x128xi32>
    %5 = arith.remsi %1, %4 : vector<8x128xi32>
    %c0_i32_1 = arith.constant 0 : i32
    %6 = vector.broadcast %c0_i32_1 : i32 to vector<8x128xi32>
    %7 = arith.cmpi ne, %5, %6 : vector<8x128xi32>
    %c0_i32_2 = arith.constant 0 : i32
    %8 = vector.broadcast %c0_i32_2 : i32 to vector<8x128xi32>
    %9 = arith.cmpi slt, %5, %8 : vector<8x128xi32>
    %c0_i32_3 = arith.constant 0 : i32
    %10 = arith.cmpi slt, %3, %c0_i32_3 : i32
    %11 = vector.broadcast %10 : i1 to vector<8x128xi1>
    %12 = vector.broadcast %11 : vector<8x128xi1> to vector<8x128xi1>
    %13 = arith.xori %9, %12 : vector<8x128xi1>
    %14 = arith.andi %13, %7 : vector<8x128xi1>
    %15 = vector.broadcast %3 : i32 to vector<8x128xi32>
    %16 = arith.addi %5, %15 : vector<8x128xi32>
    %17 = arith.select %14, %16, %5 : vector<8x128xi1>, vector<8x128xi32>
    %c0_i32_4 = arith.constant 0 : i32
    %18 = vector.broadcast %c0_i32_4 : i32 to vector<8x128xi32>
    %19 = arith.cmpi eq, %17, %18 : vector<8x128xi32>
    %c31_i32 = arith.constant 31 : i32
    %20 = vector.broadcast %c31_i32 : i32 to vector<8x128xi32>
    %21 = arith.cmpi eq, %17, %20 : vector<8x128xi32>
    %cst = arith.constant 0.000000e+00 : f32
    %22 = vector.broadcast %cst : f32 to vector<8x1xf32>
    %c0_5 = arith.constant 0 : index
    %c0_6 = arith.constant 0 : index
    %23 = vector.load %arg6[%c0_5, %c0_6] : memref<128x128xf32, #tpu.memory_space<vmem>>, vector<128x128xf32>
    %c0_7 = arith.constant 0 : index
    %c0_8 = arith.constant 0 : index
    %c0_9 = arith.constant 0 : index
    %24 = vector.load %arg2[%c0_7, %c0_8, %c0_9] : memref<2x16x8xf32, #tpu.memory_space<vmem>>, vector<1x16x8xf32>
    %25 = vector.shape_cast %24 : vector<1x16x8xf32> to vector<16x8xf32>
    %c0_10 = arith.constant 0 : index
    %c0_11 = arith.constant 0 : index
    %c0_12 = arith.constant 0 : index
    %26 = vector.load %arg3[%c0_10, %c0_11, %c0_12] : memref<2x24x16xf32, #tpu.memory_space<vmem>>, vector<1x24x16xf32>
    %27 = vector.shape_cast %26 : vector<1x24x16xf32> to vector<24x16xf32>
    %c0_13 = arith.constant 0 : index
    %c0_14 = arith.constant 0 : index
    %c0_15 = arith.constant 0 : index
    %28 = vector.load %arg4[%c0_13, %c0_14, %c0_15] : memref<2x24x1xf32, #tpu.memory_space<vmem>>, vector<1x24x1xf32>
    %29 = vector.shape_cast %28 : vector<1x24x1xf32> to vector<24x1xf32>
    %c0_16 = arith.constant 0 : index
    %c0_17 = arith.constant 0 : index
    %c0_18 = arith.constant 0 : index
    %30 = vector.load %arg5[%c0_16, %c0_17, %c0_18] : memref<2x2x128xf32, #tpu.memory_space<vmem>>, vector<1x2x128xf32>
    %31 = vector.shape_cast %30 : vector<1x2x128xf32> to vector<2x128xf32>
    %cst_19 = arith.constant dense<0.000000e+00> : vector<16x128xf32>
    %32 = tpu.matmul %25, %0, %cst_19 {dimension_numbers = #tpu.dot_dimension_numbers<[1], [0], [0], [1], [0, 0, 1, 1], [], []>} : vector<16x8xf32>, vector<8x128xf32>, vector<16x128xf32> -> vector<16x128xf32>
    %33 = vector.extract_strided_slice %29 {offsets = [0, 0], sizes = [16, 1], strides = [1, 1]} : vector<24x1xf32> to vector<16x1xf32>
    %34 = vector.broadcast %33 : vector<16x1xf32> to vector<16x128xf32>
    %35 = arith.addf %32, %34 : vector<16x128xf32>
    %cst_20 = arith.constant dense<0.000000e+00> : vector<24x128xf32>
    %36 = tpu.matmul %27, %35, %cst_20 {dimension_numbers = #tpu.dot_dimension_numbers<[1], [0], [0], [1], [0, 0, 1, 1], [], []>} : vector<24x16xf32>, vector<16x128xf32>, vector<24x128xf32> -> vector<24x128xf32>
    %37 = vector.extract_strided_slice %36 {offsets = [0, 0], sizes = [8, 128], strides = [1, 1]} : vector<24x128xf32> to vector<8x128xf32>
    %38 = vector.extract_strided_slice %36 {offsets = [8, 0], sizes = [8, 128], strides = [1, 1]} : vector<24x128xf32> to vector<8x128xf32>
    %39 = vector.extract_strided_slice %36 {offsets = [16, 0], sizes = [8, 128], strides = [1, 1]} : vector<24x128xf32> to vector<8x128xf32>
    %40 = vector.extract_strided_slice %37 {offsets = [0, 0], sizes = [8, 127], strides = [1, 1]} : vector<8x128xf32> to vector<8x127xf32>
    %41 = tpu.concatenate %22, %40 in 1 : vector<8x1xf32>, vector<8x127xf32> -> vector<8x128xf32>
    %cst_21 = arith.constant 0.000000e+00 : f32
    %42 = vector.broadcast %cst_21 : f32 to vector<8x128xf32>
    %43 = arith.select %19, %42, %41 : vector<8x128xi1>, vector<8x128xf32>
    %44 = vector.extract_strided_slice %39 {offsets = [0, 1], sizes = [8, 127], strides = [1, 1]} : vector<8x128xf32> to vector<8x127xf32>
    %45 = tpu.concatenate %44, %22 in 1 : vector<8x127xf32>, vector<8x1xf32> -> vector<8x128xf32>
    %cst_22 = arith.constant 0.000000e+00 : f32
    %46 = vector.broadcast %cst_22 : f32 to vector<8x128xf32>
    %47 = arith.select %21, %46, %45 : vector<8x128xi1>, vector<8x128xf32>
    %48 = arith.addf %43, %38 : vector<8x128xf32>
    %49 = arith.addf %48, %47 : vector<8x128xf32>
    %50 = vector.extract_strided_slice %29 {offsets = [16, 0], sizes = [8, 1], strides = [1, 1]} : vector<24x1xf32> to vector<8x1xf32>
    %51 = vector.broadcast %50 : vector<8x1xf32> to vector<8x128xf32>
    %52 = arith.addf %49, %51 : vector<8x128xf32>
    %cst_23 = arith.constant 0.000000e+00 : f32
    %53 = vector.broadcast %cst_23 : f32 to vector<8x128xf32>
    %54 = arith.maximumf %52, %53 : vector<8x128xf32>
    %55 = arith.addf %0, %54 : vector<8x128xf32>
    %cst_24 = arith.constant dense<0.000000e+00> : vector<8x128xf32>
    %56 = tpu.matmul %55, %23, %cst_24 {dimension_numbers = #tpu.dot_dimension_numbers<[1], [0], [0], [1], [0, 0, 1, 1], [], []>} : vector<8x128xf32>, vector<128x128xf32>, vector<8x128xf32> -> vector<8x128xf32>
    %57 = arith.mulf %55, %55 : vector<8x128xf32>
    %cst_25 = arith.constant dense<0.000000e+00> : vector<8x128xf32>
    %58 = tpu.matmul %57, %23, %cst_25 {dimension_numbers = #tpu.dot_dimension_numbers<[1], [0], [0], [1], [0, 0, 1, 1], [], []>} : vector<8x128xf32>, vector<128x128xf32>, vector<8x128xf32> -> vector<8x128xf32>
    %59 = arith.mulf %56, %56 : vector<8x128xf32>
    %60 = arith.subf %58, %59 : vector<8x128xf32>
    %61 = arith.subf %55, %56 : vector<8x128xf32>
    %cst_26 = arith.constant 9.99999974E-6 : f32
    %62 = vector.broadcast %cst_26 : f32 to vector<8x128xf32>
    %63 = arith.addf %60, %62 : vector<8x128xf32>
    %64 = math.rsqrt %63 : vector<8x128xf32>
    %65 = arith.mulf %61, %64 : vector<8x128xf32>
    %66 = vector.extract_strided_slice %31 {offsets = [0, 0], sizes = [1, 128], strides = [1, 1]} : vector<2x128xf32> to vector<1x128xf32>
    %67 = vector.broadcast %66 : vector<1x128xf32> to vector<8x128xf32>
    %68 = arith.mulf %65, %67 : vector<8x128xf32>
    %69 = vector.extract_strided_slice %31 {offsets = [1, 0], sizes = [1, 128], strides = [1, 1]} : vector<2x128xf32> to vector<1x128xf32>
    %70 = vector.broadcast %69 : vector<1x128xf32> to vector<8x128xf32>
    %71 = arith.addf %68, %70 : vector<8x128xf32>
    %c1 = arith.constant 1 : index
    %c0_27 = arith.constant 0 : index
    %c0_28 = arith.constant 0 : index
    %72 = vector.load %arg2[%c1, %c0_27, %c0_28] : memref<2x16x8xf32, #tpu.memory_space<vmem>>, vector<1x16x8xf32>
    %73 = vector.shape_cast %72 : vector<1x16x8xf32> to vector<16x8xf32>
    %c1_29 = arith.constant 1 : index
    %c0_30 = arith.constant 0 : index
    %c0_31 = arith.constant 0 : index
    %74 = vector.load %arg3[%c1_29, %c0_30, %c0_31] : memref<2x24x16xf32, #tpu.memory_space<vmem>>, vector<1x24x16xf32>
    %75 = vector.shape_cast %74 : vector<1x24x16xf32> to vector<24x16xf32>
    %c1_32 = arith.constant 1 : index
    %c0_33 = arith.constant 0 : index
    %c0_34 = arith.constant 0 : index
    %76 = vector.load %arg4[%c1_32, %c0_33, %c0_34] : memref<2x24x1xf32, #tpu.memory_space<vmem>>, vector<1x24x1xf32>
    %77 = vector.shape_cast %76 : vector<1x24x1xf32> to vector<24x1xf32>
    %c1_35 = arith.constant 1 : index
    %c0_36 = arith.constant 0 : index
    %c0_37 = arith.constant 0 : index
    %78 = vector.load %arg5[%c1_35, %c0_36, %c0_37] : memref<2x2x128xf32, #tpu.memory_space<vmem>>, vector<1x2x128xf32>
    %79 = vector.shape_cast %78 : vector<1x2x128xf32> to vector<2x128xf32>
    %cst_38 = arith.constant dense<0.000000e+00> : vector<16x128xf32>
    %80 = tpu.matmul %73, %71, %cst_38 {dimension_numbers = #tpu.dot_dimension_numbers<[1], [0], [0], [1], [0, 0, 1, 1], [], []>} : vector<16x8xf32>, vector<8x128xf32>, vector<16x128xf32> -> vector<16x128xf32>
    %81 = vector.extract_strided_slice %77 {offsets = [0, 0], sizes = [16, 1], strides = [1, 1]} : vector<24x1xf32> to vector<16x1xf32>
    %82 = vector.broadcast %81 : vector<16x1xf32> to vector<16x128xf32>
    %83 = arith.addf %80, %82 : vector<16x128xf32>
    %cst_39 = arith.constant dense<0.000000e+00> : vector<24x128xf32>
    %84 = tpu.matmul %75, %83, %cst_39 {dimension_numbers = #tpu.dot_dimension_numbers<[1], [0], [0], [1], [0, 0, 1, 1], [], []>} : vector<24x16xf32>, vector<16x128xf32>, vector<24x128xf32> -> vector<24x128xf32>
    %85 = vector.extract_strided_slice %84 {offsets = [0, 0], sizes = [8, 128], strides = [1, 1]} : vector<24x128xf32> to vector<8x128xf32>
    %86 = vector.extract_strided_slice %84 {offsets = [8, 0], sizes = [8, 128], strides = [1, 1]} : vector<24x128xf32> to vector<8x128xf32>
    %87 = vector.extract_strided_slice %84 {offsets = [16, 0], sizes = [8, 128], strides = [1, 1]} : vector<24x128xf32> to vector<8x128xf32>
    %88 = vector.extract_strided_slice %85 {offsets = [0, 0], sizes = [8, 127], strides = [1, 1]} : vector<8x128xf32> to vector<8x127xf32>
    %89 = tpu.concatenate %22, %88 in 1 : vector<8x1xf32>, vector<8x127xf32> -> vector<8x128xf32>
    %cst_40 = arith.constant 0.000000e+00 : f32
    %90 = vector.broadcast %cst_40 : f32 to vector<8x128xf32>
    %91 = arith.select %19, %90, %89 : vector<8x128xi1>, vector<8x128xf32>
    %92 = vector.extract_strided_slice %87 {offsets = [0, 1], sizes = [8, 127], strides = [1, 1]} : vector<8x128xf32> to vector<8x127xf32>
    %93 = tpu.concatenate %92, %22 in 1 : vector<8x127xf32>, vector<8x1xf32> -> vector<8x128xf32>
    %cst_41 = arith.constant 0.000000e+00 : f32
    %94 = vector.broadcast %cst_41 : f32 to vector<8x128xf32>
    %95 = arith.select %21, %94, %93 : vector<8x128xi1>, vector<8x128xf32>
    %96 = arith.addf %91, %86 : vector<8x128xf32>
    %97 = arith.addf %96, %95 : vector<8x128xf32>
    %98 = vector.extract_strided_slice %77 {offsets = [16, 0], sizes = [8, 1], strides = [1, 1]} : vector<24x1xf32> to vector<8x1xf32>
    %99 = vector.broadcast %98 : vector<8x1xf32> to vector<8x128xf32>
    %100 = arith.addf %97, %99 : vector<8x128xf32>
    %cst_42 = arith.constant 0.000000e+00 : f32
    %101 = vector.broadcast %cst_42 : f32 to vector<8x128xf32>
    %102 = arith.maximumf %100, %101 : vector<8x128xf32>
    %103 = arith.addf %71, %102 : vector<8x128xf32>
    %cst_43 = arith.constant dense<0.000000e+00> : vector<8x128xf32>
    %104 = tpu.matmul %103, %23, %cst_43 {dimension_numbers = #tpu.dot_dimension_numbers<[1], [0], [0], [1], [0, 0, 1, 1], [], []>} : vector<8x128xf32>, vector<128x128xf32>, vector<8x128xf32> -> vector<8x128xf32>
    %105 = arith.mulf %103, %103 : vector<8x128xf32>
    %cst_44 = arith.constant dense<0.000000e+00> : vector<8x128xf32>
    %106 = tpu.matmul %105, %23, %cst_44 {dimension_numbers = #tpu.dot_dimension_numbers<[1], [0], [0], [1], [0, 0, 1, 1], [], []>} : vector<8x128xf32>, vector<128x128xf32>, vector<8x128xf32> -> vector<8x128xf32>
    %107 = arith.mulf %104, %104 : vector<8x128xf32>
    %108 = arith.subf %106, %107 : vector<8x128xf32>
    %109 = arith.subf %103, %104 : vector<8x128xf32>
    %cst_45 = arith.constant 9.99999974E-6 : f32
    %110 = vector.broadcast %cst_45 : f32 to vector<8x128xf32>
    %111 = arith.addf %108, %110 : vector<8x128xf32>
    %112 = math.rsqrt %111 : vector<8x128xf32>
    %113 = arith.mulf %109, %112 : vector<8x128xf32>
    %114 = vector.extract_strided_slice %79 {offsets = [0, 0], sizes = [1, 128], strides = [1, 1]} : vector<2x128xf32> to vector<1x128xf32>
    %115 = vector.broadcast %114 : vector<1x128xf32> to vector<8x128xf32>
    %116 = arith.mulf %113, %115 : vector<8x128xf32>
    %117 = vector.extract_strided_slice %79 {offsets = [1, 0], sizes = [1, 128], strides = [1, 1]} : vector<2x128xf32> to vector<1x128xf32>
    %118 = vector.broadcast %117 : vector<1x128xf32> to vector<8x128xf32>
    %119 = arith.addf %116, %118 : vector<8x128xf32>
    %c0_46 = arith.constant 0 : index
    %c0_47 = arith.constant 0 : index
    %120 = vector.load %arg7[%c0_46, %c0_47] : memref<129x8xf32, #tpu.memory_space<vmem>>, vector<129x8xf32>
    %121 = vector.extract_strided_slice %120 {offsets = [0, 0], sizes = [128, 8], strides = [1, 1]} : vector<129x8xf32> to vector<128x8xf32>
    %cst_48 = arith.constant dense<0.000000e+00> : vector<8x8xf32>
    %122 = tpu.matmul %119, %121, %cst_48 {dimension_numbers = #tpu.dot_dimension_numbers<[1], [0], [0], [1], [0, 0, 1, 1], [], []>} : vector<8x128xf32>, vector<128x8xf32>, vector<8x8xf32> -> vector<8x8xf32>
    %123 = vector.extract_strided_slice %120 {offsets = [128, 0], sizes = [1, 8], strides = [1, 1]} : vector<129x8xf32> to vector<1x8xf32>
    %124 = vector.broadcast %123 : vector<1x8xf32> to vector<8x8xf32>
    %125 = arith.addf %122, %124 : vector<8x8xf32>
    %c0_49 = arith.constant 0 : index
    %c0_50 = arith.constant 0 : index
    %126 = vector.load %arg8[%c0_49, %c0_50] : memref<8x8xf32, #tpu.memory_space<vmem>>, vector<8x8xf32>
    tpu.vector_store %arg8[%c0_49, %c0_50], %125 {strides = array<i32>} : memref<8x8xf32, #tpu.memory_space<vmem>>, vector<8x8xf32>,
    return
  }
  func.func @transform_0(%arg0: i32) -> (i32, i32) {
    %c0_i32 = arith.constant 0 : i32
    %c0_i32_0 = arith.constant 0 : i32
    %c0_i32_1 = arith.constant 0 : i32
    return %c0_i32, %c0_i32_0 : i32, i32
  }
  func.func @transform_1(%arg0: i32) -> (i32, i32, i32) {
    %c0_i32 = arith.constant 0 : i32
    %c0_i32_0 = arith.constant 0 : i32
    %c0_i32_1 = arith.constant 0 : i32
    %c0_i32_2 = arith.constant 0 : i32
    return %c0_i32, %c0_i32_0, %c0_i32_1 : i32, i32, i32
  }
  func.func @transform_2(%arg0: i32) -> (i32, i32, i32) {
    %c0_i32 = arith.constant 0 : i32
    %c0_i32_0 = arith.constant 0 : i32
    %c0_i32_1 = arith.constant 0 : i32
    %c0_i32_2 = arith.constant 0 : i32
    return %c0_i32, %c0_i32_0, %c0_i32_1 : i32, i32, i32
  }
  func.func @transform_3(%arg0: i32) -> (i32, i32, i32) {
    %c0_i32 = arith.constant 0 : i32
    %c0_i32_0 = arith.constant 0 : i32
    %c0_i32_1 = arith.constant 0 : i32
    %c0_i32_2 = arith.constant 0 : i32
    return %c0_i32, %c0_i32_0, %c0_i32_1 : i32, i32, i32
  }
  func.func @transform_4(%arg0: i32) -> (i32, i32, i32) {
    %c0_i32 = arith.constant 0 : i32
    %c0_i32_0 = arith.constant 0 : i32
    %c0_i32_1 = arith.constant 0 : i32
    %c0_i32_2 = arith.constant 0 : i32
    return %c0_i32, %c0_i32_0, %c0_i32_1 : i32, i32, i32
  }
  func.func @transform_5(%arg0: i32) -> (i32, i32) {
    %c0_i32 = arith.constant 0 : i32
    %c0_i32_0 = arith.constant 0 : i32
    %c0_i32_1 = arith.constant 0 : i32
    return %c0_i32, %c0_i32_0 : i32, i32
  }
  func.func @transform_6(%arg0: i32) -> (i32, i32) {
    %c0_i32 = arith.constant 0 : i32
    %c0_i32_0 = arith.constant 0 : i32
    %c0_i32_1 = arith.constant 0 : i32
    return %c0_i32, %c0_i32_0 : i32, i32
  }
  func.func @transform_7(%arg0: i32) -> (i32, i32) {
    %c0_i32 = arith.constant 0 : i32
    %c0_i32_0 = arith.constant 0 : i32
    %c0_i32_1 = arith.constant 0 : i32
    return %c0_i32, %c0_i32_0 : i32, i32
  }
}

</mosaic_0001>

<bundles_post_ra>
// kernel: tpu_custom_call.1
= control target key start
LH: loop header
LB: loop body
LE: loop exit
PB: predicated region body
PF: predicated region fallthrough
CT: control target
= control target key end

     0   :  { %vm79_vm0 = vcmask 64512   ;;  %s1784_s0 = inlined_call_operand.vmem [shape: f32[8,128], index: 0, kind: input, shape index: {}]   ;;  %s1785_s1 = inlined_call_operand.vmem [shape: f32[2,16,8], index: 1, kind: input, shape index: {}]   ;;  %s1786_s2 = inlined_call_operand.vmem [shape: f32[2,24,16], index: 2, kind: input, shape index: {}]   ;;  %s1787_s3 = inlined_call_operand.vmem [shape: f32[2,24,1], index: 3, kind: input, shape index: {}]   ;;  %s1788_s4 = inlined_call_operand.vmem [shape: f32[2,2,128], index: 4, kind: input, shape index: {}]   ;;  %s1789_s5 = inlined_call_operand.vmem [shape: f32[128,128], index: 5, kind: input, shape index: {}]   ;;  %s1790_s6 = inlined_call_operand.vmem [shape: f32[129,8], index: 6, kind: input, shape index: {}]   ;;  %s1791_s7 = inlined_call_operand.hbm [shape: f32[8,8], index: 7, kind: output, shape index: {}]  }
   0x1   :  { %v1455_v0 = vld [vmem:[%s1784_s0] sm:$0xff]  ;;  %v61_v2 = vld [vmem:[%s1785_s1 + $0x8] sm:$0xff] }
   0x2   :  { %v60_v1 = vld [vmem:[%s1785_s1] sm:$0xff]  ;;  %1031 = vmatprep.subr.mxu1 %v1455_v0 }
   0x3   :  { %1033 = vmatprep.mubr.msk.f32.mxu1 %vm79_vm0, %v60_v1  ;;  %v65_v3 = vld [vmem:[%s1787_s3] sm:$0xff] }
   0x4   :  { %12 = vsyncpa [#allocation3], 0  ;;  %1032 = vmatpush3.msra.mxu1 %v1455_v0  ;;  %v1405_v4 = vmov 0   ;;  %v66_v5 = vld [vmem:[%s1787_s3 + $0x8] sm:$0xff]  ;;  %v1406_v6 = vmov 0.0|0.0   ;;  %vm1407_vm1 = vmmov 0   ;;  %v28_v52 = vlaneseq }
   0x5   :  { %1375 = vset.pattern.permute.xlu0 %v1405_v4  ;;  %1034 = vmatmul.mubr.msk.f32.vlgmr.msra.gmra.mrb[0].mxu1 %vm79_vm0, %v61_v2  ;;  %v1408_v7 = vmov 0.0   ;;  %v67_v8 = vld [vmem:[%s1787_s3 + $0x10] sm:$0xff]  ;;  %v62_v16 = vld [vmem:[%s1786_s2] sm:$0xff]  ;;  %vm161_vm2 = vcmask 130048   ;;  %v63_v17 = vld [vmem:[%s1786_s2 + $0x8] sm:$0xff]  ;;  %s1409_s26 = smov 1  }
   0x6   :  { %71 = vperm.xlu0 %1375, %v65_v3   ;;  %1376 = vset.pattern.permute.xlu1 %v1405_v4  ;;  %v64_v18 = vld [vmem:[%s1786_s2 + $0x10] sm:$0xff]  ;;  %v44_v19 = vld [vmem:[%s1789_s5] sm:$0xff]  ;;  %v45_v20 = vld [vmem:[%s1789_s5 + $0x8] sm:$0xff]  ;;  %s1410_s30 = smov 127   ;;  %v29_v54 = vand.u32 127, %v28_v52  ;;  %vm255_vm3 = vcmask 7168  }
   0x7   :  { %1242 = vmatprep.subr.bf16.mxu1 %v1406_v6  ;;  %1245 = vmatprep.subr.bf16.mxu0 %v1406_v6  ;;  %v46_v21 = vld [vmem:[%s1789_s5 + $0x10] sm:$0xff]  ;;  %v1510_v22 = vpack.c.bf16 %v45_v20, %v44_v19  ;;  %v47_v23 = vld [vmem:[%s1789_s5 + $0x18] sm:$0xff]  ;;  %v48_v25 = vld [vmem:[%s1789_s5 + $0x20] sm:$0xff]  ;;  %vm262_vm5 = vcmask 1039360  }
   0x8   :  { %1040 = vmatprep.mubr.msk.f32.mxu1 %vm1407_vm1, %v1408_v7  ;;  %1081 = vmatprep.mubr.msk.f32.mxu0 %vm1407_vm1, %v1408_v7  ;;  %v1517_v24 = vpack.c.bf16 %v47_v23, %v46_v21  ;;  %v49_v26 = vld [vmem:[%s1789_s5 + $0x28] sm:$0xff]  ;;  %v50_v28 = vld [vmem:[%s1789_s5 + $0x30] sm:$0xff]  ;;  %v51_v29 = vld [vmem:[%s1789_s5 + $0x38] sm:$0xff]  ;;  %v34_v55 = vand.u32 31, %v29_v54 }
   0x9   :  { %269 = vperm.xlu1 %1376, %v67_v8   ;;  %1247 = vmatpush3.bf16.msra.mxu0 %v1510_v22  ;;  %v1529_v27 = vpack.c.bf16 %v49_v26, %v48_v25  ;;  %v1541_v30 = vpack.c.bf16 %v51_v29, %v50_v28  ;;  %v52_v31 = vld [vmem:[%s1789_s5 + $0x40] sm:$0xff]  ;;  %v53_v32 = vld [vmem:[%s1789_s5 + $0x48] sm:$0xff]  ;;  %v54_v34 = vld [vmem:[%s1789_s5 + $0x50] sm:$0xff] }
   0xa   :  { %76 = vperm.xlu0 %1375, %v66_v5   ;;  %1248 = vmatprep.subr.bf16.mxu0 %v1406_v6  ;;  %v1555_v33 = vpack.c.bf16 %v53_v32, %v52_v31  ;;  %v55_v35 = vld [vmem:[%s1789_s5 + $0x58] sm:$0xff]  ;;  %v56_v37 = vld [vmem:[%s1789_s5 + $0x60] sm:$0xff]  ;;  %v57_v38 = vld [vmem:[%s1789_s5 + $0x68] sm:$0xff]  ;;  %vm1607_vm4 = vcmp.eq.s32.totalorder %v34_v55, 0  ;;  %vm1614_vm6 = vcmp.eq.s32.totalorder %v34_v55, 31 }
   0xb   :  { %v1565_v36 = vpack.c.bf16 %v55_v35, %v54_v34  ;;  %v1579_v39 = vpack.c.bf16 %v57_v38, %v56_v37  ;;  %v58_v41 = vld [vmem:[%s1789_s5 + $0x70] sm:$0xff]  ;;  %v59_v42 = vld [vmem:[%s1789_s5 + $0x78] sm:$0xff]  ;;  %v922_v48 = vld [vmem:[%s1787_s3 + $0x28] sm:$0xff] }
   0xc   :  { %v1592_v44 = vpack.c.bf16 %v59_v42, %v58_v41  ;;  %v920_v45 = vld [vmem:[%s1787_s3 + $0x18] sm:$0xff]  ;;  %v921_v51 = vld [vmem:[%s1787_s3 + $0x20] sm:$0xff]  ;;  %v805_v55 = vld [vmem:[%s1790_s6 + $0x8] sm:$0xff] }
   0xd   :  { %1250 = vmatpush3.bf16.msra.mxu0 %v1517_v24  ;;  %v916_v31 = vld [vmem:[%s1785_s1 + $0x18] sm:$0xff]  ;;  %v804_v54 = vld [vmem:[%s1790_s6] sm:$0xff] }
   0xe   :  { %1251 = vmatprep.subr.bf16.mxu0 %v1406_v6  ;;  %v917_v42 = vld [vmem:[%s1786_s2 + $0x18] sm:$0xff]  ;;  %v1345_v57 = vpack.c.bf16 %v805_v55, %v804_v54 }
   0xf   :  { %v807_v60 = vld [vmem:[%s1790_s6 + $0x18] sm:$0xff] }
  0x11   :  { %1253 = vmatpush3.bf16.msra.mxu0 %v1529_v27 }
  0x12   :  { %1254 = vmatprep.subr.bf16.mxu0 %v1406_v6 }
  0x15   :  { %1256 = vmatpush3.bf16.msra.mxu0 %v1541_v30 }
  0x16   :  { %1257 = vmatprep.subr.bf16.mxu0 %v1406_v6 }
  0x19   :  { %1259 = vmatpush3.bf16.msra.mxu0 %v1555_v33 }
  0x1a   :  { %1260 = vmatprep.subr.bf16.mxu0 %v1406_v6 }
  0x1d   :  { %1262 = vmatpush3.bf16.msra.mxu0 %v1565_v36 }
  0x1e   :  { %1263 = vmatprep.subr.bf16.mxu0 %v1406_v6 }
  0x21   :  { %1265 = vmatpush3.bf16.msra.mxu0 %v1579_v39 }
  0x22   :  { %1266 = vmatprep.subr.bf16.mxu0 %v1406_v6 }
  0x25   :  { %1268 = vmatpush3.bf16.msra.mxu0 %v1592_v44 }
  0x26   :  { %1296 = vmatprep.subr.bf16.mxu0 %v1406_v6 }
  0x85   :  { %v72_v9 = vpop.permute.xlu0 %71 }
  0x88   :  { %v270_v53 = vpop.permute.xlu1 %269 }
  0x89   :  { %v77_v10 = vpop.permute.xlu0 %76 }
  0xd8   :  { %v1035_v11 = vpop.f32.mrb[0].mxu1 }
  0xd9   :  { %v158_v12 = vadd.f32 %v1035_v11, %v77_v10  ;;  %v152_v13 = vpop.f32.mrb[1].mxu1 }
  0xda   :  { %v153_v14 = vadd.f32 %v152_v13, %v72_v9 }
  0xdc   :  { %v1243_v15 = vpack.c.bf16 %v158_v12, %v153_v14 }
  0xde   :  { %1244 = vmatpush3.bf16.msra.mxu1 %v1243_v15 }
  0xdf   :  { %1269 = vmatprep.subr.bf16.mxu1 %v1406_v6 }
  0xe1   :  { %1041 = vmatmul.mubr.msk.f32.vlgmr.msra.gmra.mrb[2].mxu1 %vm161_vm2, %v62_v16  ;;  %v1644_v16 = vshrl.u32 %v28_v52, 7 }
  0xe2   :  { %1043 = vmatprep.mubr.msk.f32.mxu1 %vm1407_vm1, %v1408_v7  ;;  %1271 = vmatpush3.bf16.msra.mxu1 %v1510_v22 }
  0xe3   :  { %1272 = vmatprep.subr.bf16.mxu1 %v1406_v6  ;;  %v429_v19 = vsub.s32 1, %v1644_v16 }
  0xe5   :  { %1044 = vmatmul.mubr.msk.f32.gmra.mrb[4].mxu1 %vm161_vm2, %v63_v17  ;;  %v424_v17 = vsub.s32 0, %v1644_v16 }
  0xe6   :  { %1046 = vmatprep.mubr.msk.f32.mxu1 %vm1407_vm1, %v1408_v7  ;;  %1274 = vmatpush3.bf16.msra.mxu1 %v1517_v24 }
  0xe7   :  { %1275 = vmatprep.subr.bf16.mxu1 %v1406_v6 }
  0xe9   :  { %1047 = vmatmul.mubr.msk.f32.gmra.mrb[6].mxu1 %vm161_vm2, %v64_v18  ;;  %v68_v18 = vld [vmem:[%s1788_s4] sm:$0x3] }
  0xea   :  { %1116 = vmatprep.mubr.msk.f32.mxu1 %vm1407_vm1, %v1408_v7  ;;  %1277 = vmatpush3.bf16.msra.mxu1 %v1529_v27  ;;  %v425_v21 = vrot.slane %v68_v18, %v424_v17  ;;  %v430_v26 = vrot.slane %v68_v18, %v429_v19  ;;  %v819_v18 = vld [vmem:[%s1790_s6 + $0x78] sm:$0xff] }
  0xeb   :  { %1278 = vmatprep.subr.bf16.mxu1 %v1406_v6 }
  0xee   :  { %1280 = vmatpush3.bf16.msra.mxu1 %v1541_v30 }
  0xef   :  { %1281 = vmatprep.subr.bf16.mxu1 %v1406_v6 }
  0xf2   :  { %1283 = vmatpush3.bf16.msra.mxu1 %v1555_v33 }
  0xf3   :  { %1284 = vmatprep.subr.bf16.mxu1 %v1406_v6 }
  0xf6   :  { %1286 = vmatpush3.bf16.msra.mxu1 %v1565_v36 }
  0xf7   :  { %1287 = vmatprep.subr.bf16.mxu1 %v1406_v6 }
  0xfa   :  { %1289 = vmatpush3.bf16.msra.mxu1 %v1579_v39 }
  0xfb   :  { %1290 = vmatprep.subr.bf16.mxu1 %v1406_v6 }
  0xfe   :  { %1292 = vmatpush3.bf16.msra.mxu1 %v1592_v44 }
 0x1b4   :  { %v237_v40 = vpop.f32.mrb[2].mxu1 }
 0x1b5   :  { %252 = vrot.lane.b32.xlu1 %v237_v40, %s1409_s26  ;;  %v1042_v43 = vpop.f32.mrb[3].mxu1 }
 0x1b6   :  { %v918_v43 = vld [vmem:[%s1786_s2 + $0x20] sm:$0xff] }
 0x1b8   :  { %v242_v46 = vpop.f32.mrb[4].mxu1 }
 0x1b9   :  { %447 = vperm.xlu1 %1376, %v920_v45   ;;  %v1045_v47 = vpop.f32.mrb[5].mxu1  ;;  %v919_v45 = vld [vmem:[%s1786_s2 + $0x28] sm:$0xff] }
 0x1bc   :  { %v247_v49 = vpop.f32.mrb[6].mxu1 }
 0x1bd   :  { %641 = vperm.xlu1 %1376, %v922_v48   ;;  %259 = vrot.lane.b32.xlu0 %v247_v49, %s1410_s30  ;;  %v1048_v50 = vpop.f32.mrb[7].mxu1 }
 0x1c1   :  { %452 = vperm.xlu0 %1375, %v921_v51  }
 0x227   :  { %v253_v56 = vpop.permute.xlu1 %252 }
 0x228   :  { %v256_v58 = vsel %vm255_vm3, 0.0, %v253_v56 }
 0x229   :  { %v257_v59 = vsel %vm1607_vm4, 0.0, %v256_v58 }
 0x22a   :  { %v265_v62 = vadd.f32 %v257_v59, %v242_v46  ;;  %v806_v59 = vld [vmem:[%s1790_s6 + $0x10] sm:$0xff] }
 0x22f   :  { %v260_v61 = vpop.permute.xlu0 %259 }
 0x230   :  { %v263_v63 = vsel %vm262_vm5, %v260_v61, 0.0 }
 0x231   :  { %v264_v1 = vsel %vm1614_vm6, 0.0, %v263_v63  ;;  %v808_v63 = vld [vmem:[%s1790_s6 + $0x20] sm:$0xff] }
 0x232   :  { %v266_v2 = vadd.f32 %v265_v62, %v264_v1  ;;  %v1348_v62 = vpack.c.bf16 %v807_v60, %v806_v59  ;;  %v809_v1 = vld [vmem:[%s1790_s6 + $0x28] sm:$0xff] }
 0x234   :  { %v272_v3 = vadd.f32 %v270_v53, %v266_v2  ;;  %v1351_v2 = vpack.c.bf16 %v809_v1, %v808_v63 }
 0x236   :  { %v273_v4 = vmax.f32 %v272_v3, 0.0  ;;  %v811_v3 = vld [vmem:[%s1790_s6 + $0x38] sm:$0xff] }
 0x238   :  { %v274_v5 = vadd.f32 %v273_v4, %v1455_v0  ;;  %v915_v0 = vld [vmem:[%s1785_s1 + $0x10] sm:$0xff]  ;;  %v448_v35 = vpop.permute.xlu1 %447 }
 0x23a   :  { %1082 = vmatmul.mubr.f32.vlgmr.msra.gmra.mrb[0].mxu0 %v274_v5  ;;  %v345_v8 = vmul.f32 %v274_v5, %v274_v5 }
 0x23b   :  { %1298 = vmatpush3.bf16.msra.mxu0 %v1510_v22  ;;  %1169 = vmatprep.mubr.msk.f32.mxu0 %vm1407_vm1, %v1408_v7 }
 0x23c   :  { %1117 = vmatmul.mubr.f32.vlgmr.msra.gmra.mrb[8].mxu1 %v345_v8  ;;  %1299 = vmatprep.subr.bf16.mxu0 %v1406_v6  ;;  %v642_v48 = vpop.permute.xlu1 %641  ;;  %v813_v8 = vld [vmem:[%s1790_s6 + $0x48] sm:$0xff] }
 0x23d   :  { %1121 = vmatprep.mubr.msk.f32.mxu1 %vm79_vm0, %v915_v0 }
 0x23f   :  { %1301 = vmatpush3.bf16.msra.mxu0 %v1517_v24 }
 0x240   :  { %1302 = vmatprep.subr.bf16.mxu0 %v1406_v6  ;;  %v453_v32 = vpop.permute.xlu0 %452 }
 0x243   :  { %1304 = vmatpush3.bf16.msra.mxu0 %v1529_v27 }
 0x244   :  { %1305 = vmatprep.subr.bf16.mxu0 %v1406_v6 }
 0x247   :  { %1307 = vmatpush3.bf16.msra.mxu0 %v1541_v30 }
 0x248   :  { %1308 = vmatprep.subr.bf16.mxu0 %v1406_v6 }
 0x24b   :  { %1310 = vmatpush3.bf16.msra.mxu0 %v1555_v33 }
 0x24c   :  { %1311 = vmatprep.subr.bf16.mxu0 %v1406_v6 }
 0x24f   :  { %1313 = vmatpush3.bf16.msra.mxu0 %v1565_v36 }
 0x250   :  { %1314 = vmatprep.subr.bf16.mxu0 %v1406_v6 }
 0x253   :  { %1316 = vmatpush3.bf16.msra.mxu0 %v1579_v39 }
 0x254   :  { %1317 = vmatprep.subr.bf16.mxu0 %v1406_v6 }
 0x257   :  { %1319 = vmatpush3.bf16.msra.mxu0 %v1592_v44 }
 0x258   :  { %1344 = vmatprep.subr.bf16.mxu0 %v1406_v6 }
 0x30d   :  { %v341_v9 = vpop.f32.mrb[0].mxu0 }
 0x30e   :  { %v416_v10 = vmul.f32 %v341_v9, %v341_v9  ;;  %v1083_v11 = vpop.f32.mrb[1].mxu0  ;;  %v418_v20 = vsub.f32 %v274_v5, %v341_v9  ;;  %v812_v5 = vld [vmem:[%s1790_s6 + $0x40] sm:$0xff]  ;;  %v814_v9 = vld [vmem:[%s1790_s6 + $0x50] sm:$0xff] }
 0x30f   :  { %v412_v12 = vpop.f32.mrb[8].mxu1  ;;  %v1357_v0 = vpack.c.bf16 %v813_v8, %v812_v5 }
 0x310   :  { %v417_v13 = vsub.f32 %v412_v12, %v416_v10  ;;  %v1118_v14 = vpop.f32.mrb[9].mxu1  ;;  %v815_v10 = vld [vmem:[%s1790_s6 + $0x58] sm:$0xff]  ;;  %v816_v12 = vld [vmem:[%s1790_s6 + $0x60] sm:$0xff] }
 0x311   :  { %v1360_v11 = vpack.c.bf16 %v815_v10, %v814_v9 }
 0x312   :  { %v419_v15 = vadd.f32 1e-05, %v417_v13  ;;  %v817_v13 = vld [vmem:[%s1790_s6 + $0x68] sm:$0xff] }
 0x313   :  { %v1363_v14 = vpack.c.bf16 %v817_v13, %v816_v12 }
 0x314   :  { %1377 = vrsqrt.f32 %v419_v15  ;;  %v818_v15 = vld [vmem:[%s1790_s6 + $0x70] sm:$0xff] }
 0x31e   :  { %v1378_v23 = vpop.eup %1377 }
 0x31f   :  { %v421_v25 = vmul.f32 %v1378_v23, %v418_v20  ;;  %v1366_v20 = vpack.c.bf16 %v819_v18, %v818_v15 }
 0x321   :  { %v426_v28 = vmul.f32 %v425_v21, %v421_v25 }
 0x323   :  { %v431_v29 = vadd.f32 %v430_v26, %v426_v28 }
 0x325   :  { %1119 = vmatprep.subr.mxu1 %v431_v29 }
 0x326   :  { %1120 = vmatpush3.msra.mxu1 %v431_v29 }
 0x327   :  { %1122 = vmatmul.mubr.msk.f32.vlgmr.msra.gmra.mrb[10].mxu1 %vm79_vm0, %v916_v31  ;;  %1293 = vmatprep.subr.bf16.mxu1 %v1406_v6 }
 0x328   :  { %1128 = vmatprep.mubr.msk.f32.mxu1 %vm1407_vm1, %v1408_v7 }
 0x3fa   :  { %v1123_v34 = vpop.f32.mrb[10].mxu1 }
 0x3fb   :  { %v533_v37 = vadd.f32 %v1123_v34, %v453_v32  ;;  %v527_v38 = vpop.f32.mrb[11].mxu1  ;;  %v923_v32 = vld [vmem:[%s1788_s4 + $0x2] sm:$0x3] }
 0x3fc   :  { %v528_v40 = vadd.f32 %v527_v38, %v448_v35  ;;  %v797_v35 = vrot.slane %v923_v32, %v424_v17 }
 0x3fe   :  { %v1294_v41 = vpack.c.bf16 %v533_v37, %v528_v40 }
 0x400   :  { %1295 = vmatpush3.bf16.msra.mxu1 %v1294_v41 }
 0x401   :  { %1320 = vmatprep.subr.bf16.mxu1 %v1406_v6 }
 0x403   :  { %1129 = vmatmul.mubr.msk.f32.vlgmr.msra.gmra.mrb[12].mxu1 %vm161_vm2, %v917_v42  ;;  %v929_v42 = vld [vmem:[%s1790_s6 + $0x80] ss:$0 sm:$0xff] }
 0x404   :  { %1131 = vmatprep.mubr.msk.f32.mxu1 %vm1407_vm1, %v1408_v7  ;;  %1322 = vmatpush3.bf16.msra.mxu1 %v1510_v22 }
 0x405   :  { %1323 = vmatprep.subr.bf16.mxu1 %v1406_v6 }
 0x407   :  { %1132 = vmatmul.mubr.msk.f32.gmra.mrb[14].mxu1 %vm161_vm2, %v918_v43 }
 0x408   :  { %1134 = vmatprep.mubr.msk.f32.mxu1 %vm1407_vm1, %v1408_v7  ;;  %1325 = vmatpush3.bf16.msra.mxu1 %v1517_v24 }
 0x409   :  { %1326 = vmatprep.subr.bf16.mxu1 %v1406_v6 }
 0x40b   :  { %1135 = vmatmul.mubr.msk.f32.gmra.mrb[16].mxu1 %vm161_vm2, %v919_v45 }
 0x40c   :  { %1328 = vmatpush3.bf16.msra.mxu1 %v1529_v27  ;;  %1204 = vmatprep.mubr.msk.f32.mxu1 %vm1407_vm1, %v1408_v7 }
 0x40d   :  { %1329 = vmatprep.subr.bf16.mxu1 %v1406_v6 }
 0x410   :  { %1331 = vmatpush3.bf16.msra.mxu1 %v1541_v30 }
 0x411   :  { %1332 = vmatprep.subr.bf16.mxu1 %v1406_v6 }
 0x414   :  { %1334 = vmatpush3.bf16.msra.mxu1 %v1555_v33 }
 0x415   :  { %1335 = vmatprep.subr.bf16.mxu1 %v1406_v6 }
 0x418   :  { %1337 = vmatpush3.bf16.msra.mxu1 %v1565_v36 }
 0x419   :  { %1338 = vmatprep.subr.bf16.mxu1 %v1406_v6 }
 0x41c   :  { %1340 = vmatpush3.bf16.msra.mxu1 %v1579_v39 }
 0x41d   :  { %1341 = vmatprep.subr.bf16.mxu1 %v1406_v6 }
 0x420   :  { %1343 = vmatpush3.bf16.msra.mxu1 %v1592_v44 }
 0x4d6   :  { %v611_v22 = vpop.f32.mrb[12].mxu1 }
 0x4d7   :  { %626 = vrot.lane.b32.xlu0 %v611_v22, %s1409_s26  ;;  %v1130_v24 = vpop.f32.mrb[13].mxu1  ;;  %s1411_s26 = smov [#allocation2]  }
 0x4d8   :  { %s902_s27 = sshll.u32 %s1411_s26, 4  ;;  %s903_s27 = int_to_ptr.vmem [resolvable:$true] %s902_s27 }
 0x4d9   :  { %s1381_s4 = scalar_lea.vmem %s903_s27, 128  ;;  %p1386_p1 = scmp.lt.s32.totalorder %s903_s27, %s903_s27 }
 0x4da   :  { %v616_v27 = vpop.f32.mrb[14].mxu1  ;;  %p1382_p0 = scmp.ne.s32.totalorder %s903_s27, %s1381_s4  ;;  %p1387_p2 = scmp.lt.s32.totalorder %s1381_s4, %s1381_s4 }
 0x4db   :  { %v1133_v30 = vpop.f32.mrb[15].mxu1 }
 0x4dc   :  { %p1388_p3 = por %p1387_p2, %p1386_p1 }
 0x4de   :  { %v621_v46 = vpop.f32.mrb[16].mxu1  ;;  %p1389_p4 = pnand %p1388_p3, %p1382_p0 }
 0x4df   :  { %632 = vrot.lane.b32.xlu1 %v621_v46, %s1410_s30  ;;  %v1136_v33 = vpop.f32.mrb[17].mxu1 }
 0x549   :  { %v627_v47 = vpop.permute.xlu0 %626 }
 0x54a   :  { %v629_v36 = vsel %vm255_vm3, 0.0, %v627_v47 }
 0x54b   :  { %v630_v39 = vsel %vm1607_vm4, 0.0, %v629_v36 }
 0x54c   :  { %v637_v50 = vadd.f32 %v630_v39, %v616_v27 }
 0x551   :  { %v633_v49 = vpop.permute.xlu1 %632 }
 0x552   :  { %v635_v44 = vsel %vm262_vm5, %v633_v49, 0.0 }
 0x553   :  { %v636_v51 = vsel %vm1614_vm6, 0.0, %v635_v44 }
 0x554   :  { %v638_v52 = vadd.f32 %v637_v50, %v636_v51 }
 0x556   :  { %v644_v53 = vadd.f32 %v642_v48, %v638_v52 }
 0x558   :  { %v645_v56 = vmax.f32 %v644_v53, 0.0 }
 0x55a   :  { %v646_v58 = vadd.f32 %v645_v56, %v431_v29 }
 0x55c   :  { %v717_v61 = vmul.f32 %v646_v58, %v646_v58  ;;  %1170 = vmatmul.mubr.f32.vlgmr.msra.gmra.mrb[2].mxu0 %v646_v58 }
 0x55d   :  { %1346 = vmatpush3.bf16.msra.mxu0 %v1345_v57  ;;  %1239 = vmatprep.mubr.msk.f32.mxu0 %vm1407_vm1, %v1408_v7  ;;  %v810_v7 = vld [vmem:[%s1790_s6 + $0x30] sm:$0xff] }
 0x55e   :  { %1205 = vmatmul.mubr.f32.vlgmr.msra.gmra.mrb[18].mxu1 %v717_v61  ;;  %1347 = vmatprep.subr.bf16.mxu0 %v1406_v6  ;;  %v1354_v4 = vpack.c.bf16 %v811_v3, %v810_v7 }
 0x561   :  { %1349 = vmatpush3.bf16.msra.mxu0 %v1348_v62 }
 0x562   :  { %1350 = vmatprep.subr.bf16.mxu0 %v1406_v6 }
 0x565   :  { %1352 = vmatpush3.bf16.msra.mxu0 %v1351_v2 }
 0x566   :  { %1353 = vmatprep.subr.bf16.mxu0 %v1406_v6 }
 0x569   :  { %1355 = vmatpush3.bf16.msra.mxu0 %v1354_v4 }
 0x56a   :  { %1356 = vmatprep.subr.bf16.mxu0 %v1406_v6 }
 0x56d   :  { %1358 = vmatpush3.bf16.msra.mxu0 %v1357_v0 }
 0x56e   :  { %1359 = vmatprep.subr.bf16.mxu0 %v1406_v6 }
 0x571   :  { %1361 = vmatpush3.bf16.msra.mxu0 %v1360_v11 }
 0x572   :  { %1362 = vmatprep.subr.bf16.mxu0 %v1406_v6 }
 0x575   :  { %1364 = vmatpush3.bf16.msra.mxu0 %v1363_v14 }
 0x576   :  { %1365 = vmatprep.subr.bf16.mxu0 %v1406_v6  ;;  %v802_v6 = vrot.slane %v923_v32, %v429_v19 }
 0x579   :  { %1367 = vmatpush3.bf16.msra.mxu0 %v1366_v20 }
 0x62f   :  { %v713_v21 = vpop.f32.mrb[2].mxu0 }
 0x630   :  { %v788_v23 = vmul.f32 %v713_v21, %v713_v21  ;;  %v1171_v25 = vpop.f32.mrb[3].mxu0  ;;  %v790_v34 = vsub.f32 %v646_v58, %v713_v21 }
 0x631   :  { %v784_v26 = vpop.f32.mrb[18].mxu1 }
 0x632   :  { %v789_v28 = vsub.f32 %v784_v26, %v788_v23  ;;  %v1206_v29 = vpop.f32.mrb[19].mxu1 }
 0x634   :  { %v791_v31 = vadd.f32 1e-05, %v789_v28 }
 0x636   :  { %1379 = vrsqrt.f32 %v791_v31 }
 0x640   :  { %v1380_v37 = vpop.eup %1379 }
 0x641   :  { %v793_v38 = vmul.f32 %v1380_v37, %v790_v34 }
 0x643   :  { %v798_v40 = vmul.f32 %v797_v35, %v793_v38 }
 0x645   :  { %v803_v41 = vadd.f32 %v802_v6, %v798_v40 }
 0x647   :  { %1240 = vmatmul.mubr.f32.vlgmr.msra.gmra.mrb[4].mxu0 %v803_v41 }
 0x71a   :  { %v891_v43 = vpop.f32.mrb[4].mxu0 }
 0x71b   :  { %v892_v45 = vadd.f32 %v929_v42, %v891_v43  ;;  %v1241_v22 = vpop.f32.mrb[5].mxu0 }
 0x71d   :  { %895 = vst.msk [vmem:[#allocation2] sm:$0xff] %vm79_vm0, %v892_v45 }
 0x71e   :  { %1392 = shalt.err (!%p1389_p4)
}
 0x71f   :  { %s1393_s29 = scalar_lea.hbm %s1791_s7, 128 }
 0x720   :  { %p1394_p5 = scmp.ne.s32.totalorder %s1791_s7, %s1393_s29  ;;  %p1397_p6 = scmp.lt.u32.totalorder %s1393_s29, %s1791_s7 }
 0x722   :  { %p1399_p7 = pnand %p1397_p6, %p1394_p5 }
 0x724   :  { %1402 = shalt.err (!%p1399_p7)
}
 0x725   :  { %905 = dma.vmem_to_hbm [thread:$0]  %s903_s27, 128, %s1791_s7, [#allocation3]  }
 0x726   :  { %1403 = dma.done.wait [#allocation3], 128  }
 0x727   :  { %1404 = vsyncadd [#allocation3], 4294967168 }
 0x728   :  { %909 = vsyncpa [#allocation3], 1 }

</bundles_post_ra>
